<compile_context>
chip_gen: v5e
topology: v5e:2x2
jax: 0.10.0
libtpu: 0.0.40
codegen_flags: <defaults>
</compile_context>

<pallas_src>
import functools

import jax
import jax.numpy as jnp
from jax.experimental import pallas as pl
from jax.experimental.pallas import tpu as pltpu

EPS = 1e-5

_LANE = 128
_SUBLANE = 8
_X_BLOCK_TARGET = 8 << 20     # target bytes of x data per block (review: 4-8 MiB)
_MIN_SPLIT_BYTES = 1 << 20    # tensors above this get >=2 parallel blocks (v7x megacore)


def _pad_to(v, m):
    return ((v + m - 1) // m) * m


def _tile_bytes(Tb, rows, TC, itemsize):
    # VMEM tile footprint including (sublane=8, lane=128) padding.
    return Tb * _pad_to(rows, _SUBLANE) * _pad_to(TC, _LANE) * itemsize


def _pipelined_footprint(Tb, B, TC, itemsize):
    """Approximate peak VMEM use of one pipelined grid step."""
    bx = _tile_bytes(Tb, B, TC, itemsize)     # x block, input dtype
    bo = bx                                   # output block, same dtype
    bf32 = _tile_bytes(Tb, B, TC, 4)          # in-kernel f32 working copies
    bwb = 2 * 2 * _tile_bytes(Tb, 1, TC, 4)   # w/b blocks, double-buffered (tiny)
    # in & out are each double-buffered by the pipeline; ~2 full-width f32 temps
    # (centered x + scaled result) are live at once inside the body.
    return 2 * bx + 2 * bo + 2 * bf32 + bwb


def _vmem_limit_bytes():
    """Generation-aware scoped-VMEM request (with a safe fallback)."""
    default = 32 << 20
    try:
        cap = pltpu.get_tpu_info().vmem_capacity_bytes
    except Exception:
        return default
    if not cap:
        return default
    # v5e/v6e (128 MiB physical) -> 64 MiB scoped; v7x (64 MiB / TC) -> 40 MiB.
    return max(32 << 20, min(64 << 20, (cap * 5) // 8))


def _choose_tiles(T, B, C, itemsize, vmem_limit):
    """Pick (Tb, TC): fold timesteps to amortize per-grid-step overhead, tile
    channels in 128-lane multiples, and keep the full pipelined VMEM footprint
    (in + out double-buffered + f32 upcast) under the scoped limit."""
    cap = int(vmem_limit * 0.7)  # headroom for compiler scratch

    def fits(tb, tc):
        return (_pipelined_footprint(tb, B, tc, itemsize) <= cap
                and tb * B * tc * itemsize <= _X_BLOCK_TARGET)

    if C % _LANE == 0:
        TC = _LANE
        d = _LANE
        while d <= C:
            if C % d == 0 and fits(1, d):
                TC = d
            d += _LANE
    else:
        # C not a multiple of 128: take the whole channel axis (block dim equal
        # to the full array dim is always legal). The wrapper guarantees this
        # branch is only reached when a (1, B, C) block fits the budget.
        TC = C

    Tb = 1
    for d in range(1, T + 1):
        if T % d == 0 and fits(d, TC):
            Tb = d
    return Tb, TC


def _ensure_two_blocks(T, C, Tb, TC, total_bytes):
    """v7x has two TensorCores; make sure a 'parallel' grid axis exposes >=2
    blocks for any tensor big enough to matter (no-op on v5e/v6e)."""
    if (T // Tb) * (C // TC) >= 2 or total_bytes < _MIN_SPLIT_BYTES:
        return Tb, TC
    if T >= 2:
        for d in range(Tb - 1, 0, -1):      # largest proper divisor of T
            if T % d == 0:
                return d, TC
    if C % _LANE == 0 and TC > _LANE:
        d = TC - _LANE
        while d >= _LANE:
            if C % d == 0:
                return Tb, d
            d -= _LANE
    return Tb, TC


def _tebn1d_kernel(x_ref, w_ref, b_ref, o_ref, *, eps):
    # x block: (Tb, B, TC); w/b blocks: (Tb, 1, TC) already folded with scale[t].
    x = x_ref[...].astype(jnp.float32)                          # (Tb, B, TC)
    mean = jnp.mean(x, axis=1, keepdims=True)                   # (Tb, 1, TC)
    centered = x - mean                                         # reused for output
    var = jnp.mean(centered * centered, axis=1, keepdims=True)  # two-pass, biased
    inv_std = jax.lax.rsqrt(var + eps)                          # (Tb, 1, TC)
    scl = inv_std * w_ref[...]          # (Tb,1,TC) = inv_std * weight * scale[t]
    shf = b_ref[...]                    # (Tb,1,TC) = bias * scale[t]
    # Single full-width pass: y = (x - mean) * scl + shf.
    o_ref[...] = (centered * scl + shf).astype(o_ref.dtype)


def tebn1d(x, weight, bias, scale, *, eps=EPS):
    """TEBN1d training-mode forward.

    x:      [T, B, C]  (time, batch, channels)
    weight: [C]        shared BatchNorm1d affine weight
    bias:   [C]        shared BatchNorm1d affine bias
    scale:  [T]        per-timestep scalar scale
    returns [T, B, C]
    """
    T, B, C = x.shape
    itemsize = x.dtype.itemsize
    vmem_limit = _vmem_limit_bytes()
    cap = int(vmem_limit * 0.7)

    # Guard for C % 128 != 0 with a large untiled (1, B, C) block: pad C up to a
    # lane multiple so the channel axis can be tiled instead of overflowing VMEM.
    C_run, pad_c = C, 0
    if C % _LANE != 0 and _pipelined_footprint(1, B, C, itemsize) > cap:
        C_run = _pad_to(C, _LANE)
        pad_c = C_run - C

    x_run = x if pad_c == 0 else jnp.pad(x, ((0, 0), (0, 0), (0, pad_c)))
    w_run = weight if pad_c == 0 else jnp.pad(weight, (0, pad_c), constant_values=1.0)
    b_run = bias if pad_c == 0 else jnp.pad(bias, (0, pad_c))

    # Fold the per-timestep scalar into tiny [T, 1, C] effective affine params:
    #   ((x - m) * inv_std * w + b) * s  ==  (x - m) * inv_std * (w*s) + (b*s)
    w_eff = (scale[:, None] * w_run[None, :]).reshape(T, 1, C_run).astype(jnp.float32)
    b_eff = (scale[:, None] * b_run[None, :]).reshape(T, 1, C_run).astype(jnp.float32)

    Tb, TC = _choose_tiles(T, B, C_run, itemsize, vmem_limit)
    Tb, TC = _ensure_two_blocks(T, C_run, Tb, TC, T * B * C_run * itemsize)
    grid = (T // Tb, C_run // TC)

    y = pl.pallas_call(
        functools.partial(_tebn1d_kernel, eps=eps),
        out_shape=jax.ShapeDtypeStruct((T, B, C_run), x.dtype),
        grid_spec=pltpu.PrefetchScalarGridSpec(
            num_scalar_prefetch=0,
            grid=grid,
            in_specs=[
                pl.BlockSpec((Tb, B, TC), lambda t, c: (t, 0, c)),   # x block
                pl.BlockSpec((Tb, 1, TC), lambda t, c: (t, 0, c)),   # weight*scale[t]
                pl.BlockSpec((Tb, 1, TC), lambda t, c: (t, 0, c)),   # bias*scale[t]
            ],
            out_specs=pl.BlockSpec((Tb, B, TC), lambda t, c: (t, 0, c)),
        ),
        compiler_params=pltpu.CompilerParams(
            # Reduction is over B inside each block -> both grid axes independent.
            dimension_semantics=("parallel", "parallel"),
            vmem_limit_bytes=vmem_limit,
        ),
    )(x_run, w_eff, b_eff)

    return y if pad_c == 0 else y[:, :, :C]


def tebn1d_reference(x, weight, bias, scale, eps=EPS):
    x32 = x.astype(jnp.float32)
    mean = jnp.mean(x32, axis=1, keepdims=True)                      # (T,1,C)
    var = jnp.mean((x32 - mean) ** 2, axis=1, keepdims=True)         # biased, (T,1,C)
    y = (x32 - mean) / jnp.sqrt(var + eps) * weight[None, None, :] + bias[None, None, :]
    y = y * scale[:, None, None]
    return y.astype(x.dtype)


def _run_case(key, T, B, C):
    kx, kw, kb, ks = jax.random.split(key, 4)
    x = jax.random.normal(kx, (T, B, C), dtype=jnp.float32)
    weight = 1.0 + 0.1 * jax.random.normal(kw, (C,), dtype=jnp.float32)
    bias = 0.1 * jax.random.normal(kb, (C,), dtype=jnp.float32)
    scale = 1.0 + 0.1 * jax.random.normal(ks, (T,), dtype=jnp.float32)

    y = jax.block_until_ready(tebn1d(x, weight, bias, scale))
    y_ref = tebn1d_reference(x, weight, bias, scale)
    assert y.shape == (T, B, C)
    assert jnp.allclose(y, y_ref, atol=1e-5, rtol=1e-5), f"mismatch at T={T},B={B},C={C}"


if __name__ == "__main__":
    key = jax.random.PRNGKey(0)
    k1, k2 = jax.random.split(key)

    # Shapes consistent with TEBN1d over CustomBatchNorm1d (2-D input per step):
    # config['T'] = 8, batch = 16, num_features = 32.
    _run_case(k1, T=8, B=16, C=32)
    # Also exercise the lane-multiple channel-tiling path.
    _run_case(k2, T=8, B=16, C=256)

    print("KERNEL_OK")
</pallas_src>

<mosaic_0001>
module attributes {stable_mosaic.version = 11 : i64} {
  func.func @_tebn1d_kernel(%arg0: i32, %arg1: i32, %arg2: memref<8x16x32xf32, #tpu.memory_space<vmem>>, %arg3: memref<8x1x32xf32, #tpu.memory_space<vmem>>, %arg4: memref<8x1x32xf32, #tpu.memory_space<vmem>>, %arg5: memref<8x16x32xf32, #tpu.memory_space<vmem>>) attributes {dimension_semantics = [#tpu.dimension_semantics<parallel>, #tpu.dimension_semantics<parallel>], iteration_bounds = array<i64: 1, 1>, scalar_prefetch = 0 : i64, scratch_operands = 0 : i64, tpu.core_type = #tpu.core_type<tc>, window_params = [{transform_indices = @transform_0, window_bounds = array<i64: 8, 16, 32>}, {transform_indices = @transform_1, window_bounds = array<i64: 8, 1, 32>}, {transform_indices = @transform_2, window_bounds = array<i64: 8, 1, 32>}, {transform_indices = @transform_3, window_bounds = array<i64: 8, 16, 32>}]} {
    %c0 = arith.constant 0 : index
    %c0_0 = arith.constant 0 : index
    %c0_1 = arith.constant 0 : index
    %0 = vector.load %arg2[%c0, %c0_0, %c0_1] : memref<8x16x32xf32, #tpu.memory_space<vmem>>, vector<8x16x32xf32>
    %cst = arith.constant dense<0.000000e+00> : vector<8x32xf32>
    %1 = vector.multi_reduction <add>, %0, %cst [1] : vector<8x16x32xf32> to vector<8x32xf32>
    %2 = vector.shape_cast %1 : vector<8x32xf32> to vector<8x1x32xf32>
    %cst_2 = arith.constant 1.600000e+01 : f32
    %3 = vector.broadcast %cst_2 : f32 to vector<8x1x32xf32>
    %4 = arith.divf %2, %3 : vector<8x1x32xf32>
    %5 = vector.broadcast %4 : vector<8x1x32xf32> to vector<8x16x32xf32>
    %6 = arith.subf %0, %5 : vector<8x16x32xf32>
    %7 = arith.mulf %6, %6 : vector<8x16x32xf32>
    %cst_3 = arith.constant dense<0.000000e+00> : vector<8x32xf32>
    %8 = vector.multi_reduction <add>, %7, %cst_3 [1] : vector<8x16x32xf32> to vector<8x32xf32>
    %9 = vector.shape_cast %8 : vector<8x32xf32> to vector<8x1x32xf32>
    %cst_4 = arith.constant 1.600000e+01 : f32
    %10 = vector.broadcast %cst_4 : f32 to vector<8x1x32xf32>
    %11 = arith.divf %9, %10 : vector<8x1x32xf32>
    %cst_5 = arith.constant 9.99999974E-6 : f32
    %12 = vector.broadcast %cst_5 : f32 to vector<8x1x32xf32>
    %13 = arith.addf %11, %12 : vector<8x1x32xf32>
    %14 = math.rsqrt %13 : vector<8x1x32xf32>
    %c0_6 = arith.constant 0 : index
    %c0_7 = arith.constant 0 : index
    %c0_8 = arith.constant 0 : index
    %15 = vector.load %arg3[%c0_6, %c0_7, %c0_8] : memref<8x1x32xf32, #tpu.memory_space<vmem>>, vector<8x1x32xf32>
    %16 = arith.mulf %14, %15 : vector<8x1x32xf32>
    %c0_9 = arith.constant 0 : index
    %c0_10 = arith.constant 0 : index
    %c0_11 = arith.constant 0 : index
    %17 = vector.load %arg4[%c0_9, %c0_10, %c0_11] : memref<8x1x32xf32, #tpu.memory_space<vmem>>, vector<8x1x32xf32>
    %18 = vector.broadcast %16 : vector<8x1x32xf32> to vector<8x16x32xf32>
    %19 = arith.mulf %6, %18 : vector<8x16x32xf32>
    %20 = vector.broadcast %17 : vector<8x1x32xf32> to vector<8x16x32xf32>
    %21 = arith.addf %19, %20 : vector<8x16x32xf32>
    %c0_12 = arith.constant 0 : index
    %c0_13 = arith.constant 0 : index
    %c0_14 = arith.constant 0 : index
    %22 = vector.load %arg5[%c0_12, %c0_13, %c0_14] : memref<8x16x32xf32, #tpu.memory_space<vmem>>, vector<8x16x32xf32>
    tpu.vector_store %arg5[%c0_12, %c0_13, %c0_14], %21 {strides = array<i32>} : memref<8x16x32xf32, #tpu.memory_space<vmem>>, vector<8x16x32xf32>,
    return
  }
  func.func @transform_0(%arg0: i32, %arg1: i32) -> (i32, i32, i32) {
    %c0_i32 = arith.constant 0 : i32
    %c0_i32_0 = arith.constant 0 : i32
    return %arg0, %c0_i32, %arg1 : i32, i32, i32
  }
  func.func @transform_1(%arg0: i32, %arg1: i32) -> (i32, i32, i32) {
    %c0_i32 = arith.constant 0 : i32
    %c0_i32_0 = arith.constant 0 : i32
    return %arg0, %c0_i32, %arg1 : i32, i32, i32
  }
  func.func @transform_2(%arg0: i32, %arg1: i32) -> (i32, i32, i32) {
    %c0_i32 = arith.constant 0 : i32
    %c0_i32_0 = arith.constant 0 : i32
    return %arg0, %c0_i32, %arg1 : i32, i32, i32
  }
  func.func @transform_3(%arg0: i32, %arg1: i32) -> (i32, i32, i32) {
    %c0_i32 = arith.constant 0 : i32
    %c0_i32_0 = arith.constant 0 : i32
    return %arg0, %c0_i32, %arg1 : i32, i32, i32
  }
}

</mosaic_0001>

<bundles_post_ra>
// kernel: tpu_custom_call.1
= control target key start
LH: loop header
LB: loop body
LE: loop exit
PB: predicated region body
PF: predicated region fallthrough
CT: control target
= control target key end

     0   :  { %8 = vsyncpa [#allocation3], 0  ;;  %s977_s0 = inlined_call_operand.hbm [shape: f32[8,16,32], index: 0, kind: input, shape index: {}]   ;;  %s978_s1 = inlined_call_operand.hbm [shape: f32[8,1,32], index: 1, kind: input, shape index: {}]   ;;  %s979_s2 = inlined_call_operand.hbm [shape: f32[8,1,32], index: 2, kind: input, shape index: {}]   ;;  %s980_s3 = inlined_call_operand.hbm [shape: f32[8,16,32], index: 3, kind: output, shape index: {}]  }
   0x1   :  { %9 = vsyncpa [#allocation6], 0  ;;  %s28_s14 = sshll.u32 %s978_s1, 4  ;;  %s29_s14 = int_to_ptr.hbm [resolvable:$true] %s28_s14 }
   0x2   :  { %10 = vsyncpa [#allocation4], 0  ;;  %s627_s15 = smov [#allocation5]   ;;  %s15_s19 = sshll.u32 %s977_s0, 4  ;;  %s16_s19 = int_to_ptr.hbm [resolvable:$true] %s15_s19 }
   0x3   :  { %s30_s16 = sshll.u32 %s627_s15, 4  ;;  %s628_s20 = smov 16   ;;  %s31_s16 = int_to_ptr.vmem [resolvable:$true] %s30_s16 }
   0x4   :  { %s629_s21 = smov 1   ;;  %s630_s22 = smov [#allocation2]  }
   0x5   :  { %36 = dma.hbm_to_vmem [thread:$0]  %s29_s14, 128, %s31_s16, [#allocation6], %s628_s20, %s628_s20, %s629_s21  }
   0x6   :  { %s17_s23 = sshll.u32 %s630_s22, 4  ;;  %s631_s24 = smov 128   ;;  %s18_s23 = int_to_ptr.vmem [resolvable:$true] %s17_s23 }
   0x7   :  { %s632_s25 = smov 8   ;;  %s41_s27 = sshll.u32 %s979_s2, 4  ;;  %s42_s27 = int_to_ptr.hbm [resolvable:$true] %s41_s27 }
   0x8   :  { %23 = dma.hbm_to_vmem [thread:$0]  %s16_s19, 2048, %s18_s23, [#allocation3], %s631_s24, %s631_s24, %s632_s25  }
   0x9   :  { %s633_s28 = smov [#allocation7]  }
   0xa   :  { %s43_s0 = sshll.u32 %s633_s28, 4  ;;  %s44_s0 = int_to_ptr.vmem [resolvable:$true] %s43_s0 }
   0xb   :  { %49 = dma.hbm_to_vmem [thread:$0]  %s42_s27, 128, %s44_s0, [#allocation6], %s628_s20, %s628_s20, %s629_s21  }
   0xc   :  { %621 = dma.done.wait [#allocation3], 2048  }
   0xd   :  { %622 = vsyncadd [#allocation3], 4294965248 }
   0xe   :  { %623 = dma.done.wait [#allocation6], 256  }
   0xf   :  { %624 = vsyncadd [#allocation6], 4294967040  ;;  %v634_v0 = vmov 16.0   ;;  %vm78_vm0 = vcmask 261120   ;;  %v668_v2 = vld [vmem:[#allocation2] sm:$0xff]  ;;  %v670_v3 = vld [vmem:[#allocation2 + $0x8] sm:$0xff] }
  0x10   :  { %507 = vrcp.f32 %v634_v0  ;;  %v79_v4 = vsel %vm78_vm0, %v668_v2, 0.0  ;;  %v80_v5 = vsel %vm78_vm0, %v670_v3, 0.0  ;;  %v676_v7 = vld [vmem:[#allocation2 + $0x10] sm:$0xff]  ;;  %v678_v8 = vld [vmem:[#allocation2 + $0x18] sm:$0xff]  ;;  %v680_v9 = vld [vmem:[#allocation2 + $0x20] sm:$0xff]  ;;  %s635_s2 = smov [#allocation8]  }
  0x11   :  { %v81_v10 = vadd.f32 %v80_v5, %v79_v4  ;;  %v88_v11 = vsel %vm78_vm0, %v676_v7, 0.0  ;;  %v89_v12 = vsel %vm78_vm0, %v678_v8, 0.0  ;;  %v686_v13 = vld [vmem:[#allocation2 + $0x28] sm:$0xff]  ;;  %v97_v14 = vsel %vm78_vm0, %v680_v9, 0.0  ;;  %v692_v18 = vld [vmem:[#allocation2 + $0x30] sm:$0xff]  ;;  %v694_v19 = vld [vmem:[#allocation2 + $0x38] sm:$0xff] }
  0x12   :  { %v90_v16 = vadd.f32 %v89_v12, %v88_v11  ;;  %v98_v17 = vsel %vm78_vm0, %v686_v13, 0.0  ;;  %v106_v22 = vsel %vm78_vm0, %v692_v18, 0.0  ;;  %v107_v23 = vsel %vm78_vm0, %v694_v19, 0.0  ;;  %v700_v24 = vld [vmem:[#allocation2 + $0x40] sm:$0xff]  ;;  %v702_v28 = vld [vmem:[#allocation2 + $0x48] sm:$0xff]  ;;  %v706_v30 = vld [vmem:[#allocation2 + $0x50] sm:$0xff] }
  0x13   :  { %v82_v20 = vrot.slane %v81_v10, 4  ;;  %v99_v21 = vadd.f32 %v98_v17, %v97_v14  ;;  %v108_v27 = vadd.f32 %v107_v23, %v106_v22  ;;  %v115_v29 = vsel %vm78_vm0, %v700_v24, 0.0  ;;  %v710_v34 = vld [vmem:[#allocation2 + $0x58] sm:$0xff]  ;;  %v714_v40 = vld [vmem:[#allocation2 + $0x60] sm:$0xff]  ;;  %v716_v41 = vld [vmem:[#allocation2 + $0x68] sm:$0xff]  ;;  %s474_s29 = sshll.u32 %s635_s2, 4  ;;  %s475_s29 = int_to_ptr.vmem [resolvable:$true] %s474_s29 }
  0x14   :  { %v91_v26 = vrot.slane %v90_v16, 4  ;;  %v116_v33 = vsel %vm78_vm0, %v702_v28, 0.0  ;;  %v124_v35 = vsel %vm78_vm0, %v706_v30, 0.0  ;;  %v125_v44 = vsel %vm78_vm0, %v710_v34, 0.0  ;;  %v724_v57 = vld [vmem:[#allocation2 + $0x70] sm:$0xff]  ;;  %v728_v5 = vld [vmem:[#allocation2 + $0x78] sm:$0xff] }
  0x15   :  { %v83_v31 = vadd.f32 %v82_v20, %v81_v10  ;;  %v100_v32 = vrot.slane %v99_v21, 4  ;;  %v109_v38 = vrot.slane %v108_v27, 4  ;;  %v117_v39 = vadd.f32 %v116_v33, %v115_v29  ;;  %s476_s5 = sshll.u32 %s980_s3, 4  ;;  %s477_s5 = int_to_ptr.hbm [resolvable:$true] %s476_s5 }
  0x16   :  { %v508_v1 = vpop.eup %507  ;;  %v92_v37 = vadd.f32 %v91_v26, %v90_v16  ;;  %v133_v45 = vsel %vm78_vm0, %v714_v40, 0.0  ;;  %v126_v51 = vadd.f32 %v125_v44, %v124_v35  ;;  %v134_v52 = vsel %vm78_vm0, %v716_v41, 0.0 }
  0x17   :  { %v152_v6 = vmul.f32 16.0, %v508_v1  ;;  %v84_v42 = vrot.slane %v83_v31, 2  ;;  %v101_v43 = vadd.f32 %v100_v32, %v99_v21  ;;  %vm156_vm1 = vweird.f32 %v508_v1 }
  0x18   :  { %v93_v46 = vrot.slane %v92_v37, 2  ;;  %v110_v47 = vadd.f32 %v109_v38, %v108_v27  ;;  %v118_v48 = vrot.slane %v117_v39, 4  ;;  %v135_v56 = vadd.f32 %v134_v52, %v133_v45 }
  0x19   :  { %v153_v15 = vsub.f32 1.0, %v152_v6  ;;  %v85_v49 = vadd.f32 %v84_v42, %v83_v31  ;;  %v102_v50 = vrot.slane %v101_v43, 2  ;;  %v127_v61 = vrot.slane %v126_v51, 4 }
  0x1a   :  { %v94_v53 = vadd.f32 %v93_v46, %v92_v37  ;;  %v111_v54 = vrot.slane %v110_v47, 2  ;;  %v119_v55 = vadd.f32 %v118_v48, %v117_v39  ;;  %v136_v4 = vrot.slane %v135_v56, 4 }
  0x1b   :  { %v154_v25 = vmul.f32 %v508_v1, %v153_v15  ;;  %v86_v58 = vrot.slane %v85_v49, 1  ;;  %v103_v60 = vadd.f32 %v102_v50, %v101_v43  ;;  %v128_v11 = vadd.f32 %v127_v61, %v126_v51 }
  0x1c   :  { %v95_v62 = vrot.slane %v94_v53, 1  ;;  %v112_v63 = vadd.f32 %v111_v54, %v110_v47  ;;  %v120_v0 = vrot.slane %v119_v55, 2  ;;  %v732_v12 = vsel %vm78_vm0, %v724_v57, 0.0 }
  0x1d   :  { %v155_v36 = vadd.f32 %v508_v1, %v154_v25  ;;  %v87_v6 = vadd.f32 %v86_v58, %v85_v49  ;;  %v104_v10 = vrot.slane %v103_v60, 1  ;;  %v129_v21 = vrot.slane %v128_v11, 2 }
  0x1e   :  { %v96_v14 = vadd.f32 %v95_v62, %v94_v53  ;;  %v113_v15 = vrot.slane %v112_v63, 1  ;;  %v121_v16 = vadd.f32 %v120_v0, %v119_v55  ;;  %v737_v22 = vsel %vm78_vm0, %v728_v5, 0.0 }
  0x1f   :  { %v726_v59 = vsel %vm156_vm1, %v508_v1, %v155_v36  ;;  %v137_v1 = vadd.f32 %v136_v4, %v135_v56  ;;  %v105_v20 = vadd.f32 %v104_v10, %v103_v60  ;;  %v130_v33 = vadd.f32 %v129_v21, %v128_v11 }
  0x20   :  { %v158_v17 = vmul.f32 %v726_v59, %v87_v6  ;;  %v159_v23 = vmul.f32 %v726_v59, %v96_v14  ;;  %v114_v25 = vadd.f32 %v113_v15, %v112_v63  ;;  %v122_v26 = vrot.slane %v121_v16, 1 }
  0x21   :  { %v138_v27 = vrot.slane %v137_v1, 2  ;;  %v160_v32 = vmul.f32 %v726_v59, %v105_v20  ;;  %v131_v61 = vrot.slane %v130_v33, 1 }
  0x22   :  { %v741_v29 = vsub.f32 %v668_v2, %v158_v17  ;;  %v744_v31 = vsub.f32 %v670_v3, %v158_v17  ;;  %v748_v35 = vsub.f32 %v676_v7, %v159_v23  ;;  %v751_v36 = vsub.f32 %v678_v8, %v159_v23 }
  0x23   :  { %v161_v37 = vmul.f32 %v726_v59, %v114_v25  ;;  %v123_v38 = vadd.f32 %v122_v26, %v121_v16  ;;  %v759_v3 = vsub.f32 %v680_v9, %v160_v32  ;;  %v762_v42 = vsub.f32 %v686_v13, %v160_v32 }
  0x24   :  { %v182_v39 = vmul.f32 %v741_v29, %v741_v29  ;;  %v183_v2 = vmul.f32 %v744_v31, %v744_v31  ;;  %v184_v7 = vmul.f32 %v748_v35, %v748_v35  ;;  %v185_v8 = vmul.f32 %v751_v36, %v751_v36 }
  0x25   :  { %v769_v43 = vsub.f32 %v692_v18, %v161_v37  ;;  %v772_v44 = vsub.f32 %v694_v19, %v161_v37  ;;  %v186_v13 = vmul.f32 %v759_v3, %v759_v3  ;;  %v187_v46 = vmul.f32 %v762_v42, %v762_v42 }
  0x26   :  { %v198_v45 = vsel %vm78_vm0, %v182_v39, 0.0  ;;  %v199_v9 = vsel %vm78_vm0, %v183_v2, 0.0  ;;  %v207_v48 = vsel %vm78_vm0, %v184_v7, 0.0  ;;  %v208_v49 = vsel %vm78_vm0, %v185_v8, 0.0 }
  0x27   :  { %v200_v47 = vadd.f32 %v199_v9, %v198_v45  ;;  %v188_v18 = vmul.f32 %v769_v43, %v769_v43  ;;  %v209_v19 = vadd.f32 %v208_v49, %v207_v48  ;;  %v216_v50 = vsel %vm78_vm0, %v186_v13, 0.0 }
  0x28   :  { %v217_v51 = vsel %vm78_vm0, %v187_v46, 0.0  ;;  %v189_v52 = vmul.f32 %v772_v44, %v772_v44  ;;  %v162_v56 = vmul.f32 %v726_v59, %v123_v38  ;;  %v139_v62 = vadd.f32 %v138_v27, %v137_v1 }
  0x29   :  { %v201_v53 = vrot.slane %v200_v47, 4  ;;  %v218_v54 = vadd.f32 %v217_v51, %v216_v50  ;;  %v225_v55 = vsel %vm78_vm0, %v188_v18, 0.0  ;;  %v210_v58 = vrot.slane %v209_v19, 4 }
  0x2a   :  { %v226_v60 = vsel %vm78_vm0, %v189_v52, 0.0  ;;  %v792_v6 = vsub.f32 %v700_v24, %v162_v56  ;;  %v795_v11 = vsub.f32 %v702_v28, %v162_v56  ;;  %v132_v14 = vadd.f32 %v131_v61, %v130_v33 }
  0x2b   :  { %v202_v63 = vadd.f32 %v201_v53, %v200_v47  ;;  %v219_v0 = vrot.slane %v218_v54, 4  ;;  %v227_v4 = vadd.f32 %v226_v60, %v225_v55  ;;  %v211_v10 = vadd.f32 %v210_v58, %v209_v19 }
  0x2c   :  { %v140_v15 = vrot.slane %v139_v62, 1  ;;  %v190_v21 = vmul.f32 %v792_v6, %v792_v6  ;;  %v191_v1 = vmul.f32 %v795_v11, %v795_v11  ;;  %v163_v25 = vmul.f32 %v726_v59, %v132_v14 }
  0x2d   :  { %v203_v16 = vrot.slane %v202_v63, 2  ;;  %v220_v17 = vadd.f32 %v219_v0, %v218_v54  ;;  %v228_v20 = vrot.slane %v227_v4, 4  ;;  %v212_v23 = vrot.slane %v211_v10, 2 }
  0x2e   :  { %v141_v24 = vadd.f32 %v140_v15, %v139_v62  ;;  %v234_v28 = vsel %vm78_vm0, %v190_v21, 0.0  ;;  %v235_v37 = vsel %vm78_vm0, %v191_v1, 0.0  ;;  %v805_v38 = vsub.f32 %v706_v30, %v163_v25 }
  0x2f   :  { %v204_v26 = vadd.f32 %v203_v16, %v202_v63  ;;  %v221_v27 = vrot.slane %v220_v17, 2  ;;  %v229_v32 = vadd.f32 %v228_v20, %v227_v4  ;;  %v213_v33 = vadd.f32 %v212_v23, %v211_v10 }
  0x30   :  { %v808_v39 = vsub.f32 %v710_v34, %v163_v25  ;;  %v236_v45 = vadd.f32 %v235_v37, %v234_v28  ;;  %v192_v13 = vmul.f32 %v805_v38, %v805_v38  ;;  %v164_v47 = vmul.f32 %v726_v59, %v141_v24 }
  0x31   :  { %v205_v2 = vrot.slane %v204_v26, 1  ;;  %v222_v7 = vadd.f32 %v221_v27, %v220_v17  ;;  %v230_v8 = vrot.slane %v229_v32, 2  ;;  %v214_v9 = vrot.slane %v213_v33, 1 }
  0x32   :  { %v193_v46 = vmul.f32 %v808_v39, %v808_v39  ;;  %v237_v18 = vrot.slane %v236_v45, 4  ;;  %v243_v34 = vsel %vm78_vm0, %v192_v13, 0.0  ;;  %v818_v51 = vsub.f32 %v714_v40, %v164_v47 }
  0x33   :  { %v206_v48 = vadd.f32 %v205_v2, %v204_v26  ;;  %v223_v49 = vrot.slane %v222_v7, 1  ;;  %v231_v30 = vadd.f32 %v230_v8, %v229_v32  ;;  %v215_v19 = vadd.f32 %v214_v9, %v213_v33 }
  0x34   :  { %v244_v50 = vsel %vm78_vm0, %v193_v46, 0.0  ;;  %v238_v55 = vadd.f32 %v237_v18, %v236_v45  ;;  %v823_v60 = vsub.f32 %v716_v41, %v164_v47  ;;  %v194_v61 = vmul.f32 %v818_v51, %v818_v51 }
  0x35   :  { %v270_v52 = vmul.f32 %v206_v48, %v726_v59  ;;  %v224_v53 = vadd.f32 %v223_v49, %v222_v7  ;;  %v232_v54 = vrot.slane %v231_v30, 1  ;;  %v271_v56 = vmul.f32 %v215_v19, %v726_v59 }
  0x36   :  { %v245_v58 = vadd.f32 %v244_v50, %v243_v34  ;;  %v239_v40 = vrot.slane %v238_v55, 2  ;;  %v195_v14 = vmul.f32 %v823_v60, %v823_v60  ;;  %v144_v15 = vadd.f32 %v737_v22, %v732_v12 }
  0x37   :  { %v278_v62 = vadd.f32 1e-05, %v270_v52  ;;  %v272_v63 = vmul.f32 %v224_v53, %v726_v59  ;;  %v233_v0 = vadd.f32 %v232_v54, %v231_v30  ;;  %v828_v4 = vadd.f32 1e-05, %v271_v56 }
  0x38   :  { %v246_v10 = vrot.slane %v245_v58, 4  ;;  %v240_v17 = vadd.f32 %v239_v40, %v238_v55  ;;  %v252_v21 = vsel %vm78_vm0, %v194_v61, 0.0  ;;  %v253_v24 = vsel %vm78_vm0, %v195_v14, 0.0 }
  0x39   :  { %509 = vrsqrt.f32 %v278_v62  ;;  %v834_v41 = vadd.f32 1e-05, %v272_v63  ;;  %v273_v16 = vmul.f32 %v233_v0, %v726_v59  ;;  %v145_v12 = vrot.slane %v144_v15, 4 }
  0x3a   :  { %511 = vrsqrt.f32 %v828_v4  ;;  %v247_v20 = vadd.f32 %v246_v10, %v245_v58  ;;  %v241_v1 = vrot.slane %v240_v17, 1  ;;  %v254_v22 = vadd.f32 %v253_v24, %v252_v21  ;;  %v367_v24 = vld [vmem:[#allocation5 + $0x1] sm:$0x1] }
  0x3b   :  { %513 = vrsqrt.f32 %v834_v41  ;;  %v840_v23 = vadd.f32 1e-05, %v273_v16  ;;  %v146_v32 = vadd.f32 %v145_v12, %v144_v15  ;;  %vm292_vm2 = vweird.f32 %v278_v62  ;;  %v370_v12 = vld [vmem:[#allocation5 + $0x4] sm:$0x1] }
  0x3c   :  { %v248_v25 = vrot.slane %v247_v20, 2  ;;  %v242_v26 = vadd.f32 %v241_v1, %v240_v17  ;;  %vm302_vm3 = vweird.f32 %v828_v4  ;;  %v255_v33 = vrot.slane %v254_v22, 4  ;;  %v366_v17 = vld [vmem:[#allocation5] sm:$0x1] }
  0x3d   :  { %515 = vrsqrt.f32 %v840_v23  ;;  %vm312_vm4 = vweird.f32 %v834_v41  ;;  %vm322_vm5 = vweird.f32 %v840_v23  ;;  %v147_v46 = vrot.slane %v146_v32, 2 }
  0x3e   :  { %v249_v27 = vadd.f32 %v248_v25, %v247_v20  ;;  %v274_v7 = vmul.f32 %v242_v26, %v726_v59  ;;  %v256_v13 = vadd.f32 %v255_v33, %v254_v22 }
  0x3f   :  { %v510_v28 = vpop.eup %509  ;;  %v148_v50 = vadd.f32 %v147_v46, %v146_v32 }
  0x40   :  { %v512_v37 = vpop.eup %511  ;;  %v287_v2 = vmul.f32 %v510_v28, %v278_v62  ;;  %v250_v8 = vrot.slane %v249_v27, 1  ;;  %vm293_vm6 = vweird.f32 %v510_v28  ;;  %v850_v49 = vadd.f32 1e-05, %v274_v7 }
  0x41   :  { %v514_v45 = vpop.eup %513  ;;  %v297_v9 = vmul.f32 %v512_v37, %v828_v4  ;;  %v257_v34 = vrot.slane %v256_v13, 2  ;;  %vm303_vm7 = vweird.f32 %v512_v37  ;;  %vm861_vm9 = vmor %vm292_vm2, %vm293_vm6  ;;  %v149_v15 = vrot.slane %v148_v50, 1 }
  0x42   :  { %v288_v47 = vmul.f32 %v510_v28, %v287_v2  ;;  %v307_v48 = vmul.f32 %v514_v45, %v834_v41  ;;  %v251_v19 = vadd.f32 %v250_v8, %v249_v27  ;;  %vm313_vm8 = vweird.f32 %v514_v45  ;;  %vm871_vm11 = vmor %vm302_vm3, %vm303_vm7  ;;  %v368_v27 = vld [vmem:[#allocation5 + $0x2] sm:$0x1] }
  0x43   :  { %v852_v30 = vpop.eup %515  ;;  %v298_v18 = vmul.f32 %v512_v37, %v297_v9  ;;  %517 = vrsqrt.f32 %v850_v49  ;;  %v258_v0 = vadd.f32 %v257_v34, %v256_v13  ;;  %vm878_vm12 = vmor %vm312_vm4, %vm313_vm8  ;;  %v150_v22 = vadd.f32 %v149_v15, %v148_v50  ;;  %v500_v50 = vld [vmem:[#allocation7 + $0x1] ss:$0 sm:$0xff] }
  0x44   :  { %v289_v52 = vmul.f32 0.5, %v288_v47  ;;  %v308_v53 = vmul.f32 %v514_v45, %v307_v48  ;;  %v317_v54 = vmul.f32 %v852_v30, %v840_v23  ;;  %v275_v56 = vmul.f32 %v251_v19, %v726_v59  ;;  %v369_v47 = vld [vmem:[#allocation5 + $0x3] sm:$0x1]  ;;  %v499_v23 = vld [vmem:[#allocation7] ss:$0 sm:$0xff] }
  0x45   :  { %v299_v55 = vmul.f32 0.5, %v298_v18  ;;  %vm323_vm10 = vweird.f32 %v852_v30  ;;  %v259_v1 = vrot.slane %v258_v0, 1  ;;  %vm332_vm14 = vweird.f32 %v850_v49 }
  0x46   :  { %v290_v58 = vsub.f32 1.5, %v289_v52  ;;  %v309_v61 = vmul.f32 0.5, %v308_v53  ;;  %v318_v63 = vmul.f32 %v852_v30, %v317_v54  ;;  %v866_v14 = vadd.f32 1e-05, %v275_v56  ;;  %vm893_vm13 = vmor %vm322_vm5, %vm323_vm10 }
  0x47   :  { %v300_v10 = vsub.f32 1.5, %v299_v55  ;;  %v260_v33 = vadd.f32 %v259_v1, %v258_v0 }
  0x48   :  { %v291_v16 = vmul.f32 %v510_v28, %v290_v58  ;;  %v310_v62 = vsub.f32 1.5, %v309_v61  ;;  %v319_v21 = vmul.f32 0.5, %v318_v63  ;;  %519 = vrsqrt.f32 %v866_v14  ;;  %v501_v61 = vld [vmem:[#allocation7 + $0x2] ss:$0 sm:$0xff] }
  0x49   :  { %v301_v25 = vmul.f32 %v512_v37, %v300_v10  ;;  %v885_v2 = vpop.eup %517  ;;  %v276_v19 = vmul.f32 %v260_v33, %v726_v59  ;;  %vm342_vm2 = vweird.f32 %v866_v14 }
  0x4a   :  { %v295_v4 = vsel %vm861_vm9, %v510_v28, %v291_v16  ;;  %v311_v26 = vmul.f32 %v514_v45, %v310_v62  ;;  %v320_v32 = vsub.f32 1.5, %v319_v21  ;;  %v165_v28 = vmul.f32 %v726_v59, %v150_v22 }
  0x4b   :  { %v374_v7 = vmul.f32 %v366_v17, %v295_v4  ;;  %v305_v41 = vsel %vm871_vm11, %v512_v37, %v301_v25  ;;  %v327_v37 = vmul.f32 %v885_v2, %v850_v49  ;;  %vm333_vm15 = vweird.f32 %v885_v2 }
  0x4c   :  { %v375_v9 = vmul.f32 %v367_v24, %v305_v41  ;;  %v315_v13 = vsel %vm878_vm12, %v514_v45, %v311_v26  ;;  %v321_v46 = vmul.f32 %v852_v30, %v320_v32  ;;  %v911_v53 = vsub.f32 %v724_v57, %v165_v28  ;;  %vm925_vm1 = vmor %vm332_vm14, %vm333_vm15 }
  0x4d   :  { %v390_v48 = vperm.slane %v374_v7, 0  ;;  %v376_v18 = vmul.f32 %v368_v27, %v315_v13  ;;  %v328_v45 = vmul.f32 %v885_v2, %v327_v37  ;;  %v284_v22 = vadd.f32 1e-05, %v276_v19  ;;  %v503_v7 = vld [vmem:[#allocation7 + $0x4] ss:$0 sm:$0xff] }
  0x4e   :  { %v391_v34 = vperm.slane %v375_v9, 0  ;;  %v325_v52 = vsel %vm893_vm13, %v852_v30, %v321_v46  ;;  %v520_v54 = vpop.eup %519  ;;  %v936_v4 = vsub.f32 %v728_v5, %v165_v28  ;;  %v196_v26 = vmul.f32 %v911_v53, %v911_v53  ;;  %v371_v28 = vld [vmem:[#allocation5 + $0x5] sm:$0x1] }
  0x4f   :  { %v398_v55 = vmul.f32 %v390_v48, %v741_v29  ;;  %v399_v56 = vmul.f32 %v390_v48, %v744_v31  ;;  %v392_v58 = vperm.slane %v376_v18, 0  ;;  %v377_v63 = vmul.f32 %v369_v47, %v325_v52  ;;  %v502_v31 = vld [vmem:[#allocation7 + $0x3] ss:$0 sm:$0xff]  ;;  %v504_v52 = vld [vmem:[#allocation7 + $0x5] ss:$0 sm:$0xff] }
  0x50   :  { %v400_v0 = vmul.f32 %v391_v34, %v748_v35  ;;  %v401_v40 = vmul.f32 %v391_v34, %v751_v36  ;;  %v329_v10 = vmul.f32 0.5, %v328_v45  ;;  %v337_v30 = vmul.f32 %v520_v54, %v866_v14 }
  0x51   :  { %v438_v15 = vadd.f32 %v499_v23, %v398_v55  ;;  %v439_v16 = vadd.f32 %v499_v23, %v399_v56  ;;  %v402_v57 = vmul.f32 %v392_v58, %v759_v3  ;;  %v403_v17 = vmul.f32 %v392_v58, %v762_v42 }
  0x52   :  { %v440_v20 = vadd.f32 %v500_v50, %v400_v0  ;;  %v441_v29 = vadd.f32 %v500_v50, %v401_v40  ;;  %v393_v62 = vperm.slane %v377_v63, 0  ;;  %v330_v21 = vsub.f32 1.5, %v329_v10 }
  0x53   :  { %454 = vst.msk [vmem:[#allocation8] sm:$0xff] %vm78_vm0, %v438_v15  ;;  %v442_v1 = vadd.f32 %v501_v61, %v402_v57  ;;  %v443_v35 = vadd.f32 %v501_v61, %v403_v17  ;;  %v338_v3 = vmul.f32 %v520_v54, %v337_v30  ;;  %vm343_vm3 = vweird.f32 %v520_v54  ;;  %v372_v30 = vld [vmem:[#allocation5 + $0x6] sm:$0x1]  ;;  %v505_v17 = vld [vmem:[#allocation7 + $0x6] ss:$0 sm:$0xff] }
  0x54   :  { %455 = vst.msk [vmem:[#allocation8 + $0x8] sm:$0xff] %vm78_vm0, %v439_v16  ;;  %v404_v42 = vmul.f32 %v393_v62, %v769_v43  ;;  %v405_v25 = vmul.f32 %v393_v62, %v772_v44  ;;  %v331_v24 = vmul.f32 %v885_v2, %v330_v21  ;;  %521 = vrsqrt.f32 %v284_v22  ;;  %vm344_vm4 = vmor %vm342_vm2, %vm343_vm3 }
  0x55   :  { %456 = vst.msk [vmem:[#allocation8 + $0x10] sm:$0xff] %vm78_vm0, %v440_v20  ;;  %v339_v49 = vmul.f32 0.5, %v338_v3  ;;  %v197_v5 = vmul.f32 %v936_v4, %v936_v4  ;;  %v261_v41 = vsel %vm78_vm0, %v196_v26, 0.0  ;;  %vm352_vm5 = vweird.f32 %v284_v22 }
  0x56   :  { %457 = vst.msk [vmem:[#allocation8 + $0x18] sm:$0xff] %vm78_vm0, %v441_v29  ;;  %v444_v27 = vadd.f32 %v502_v31, %v404_v42  ;;  %v445_v43 = vadd.f32 %v502_v31, %v405_v25  ;;  %v335_v44 = vsel %vm925_vm1, %v885_v2, %v331_v24  ;;  %v373_v25 = vld [vmem:[#allocation5 + $0x7] sm:$0x1] }
  0x57   :  { %458 = vst.msk [vmem:[#allocation8 + $0x20] sm:$0xff] %vm78_vm0, %v442_v1  ;;  %v378_v32 = vmul.f32 %v370_v12, %v335_v44  ;;  %v340_v33 = vsub.f32 1.5, %v339_v49  ;;  %v262_v9 = vsel %vm78_vm0, %v197_v5, 0.0  ;;  %v506_v12 = vld [vmem:[#allocation7 + $0x7] ss:$0 sm:$0xff] }
  0x58   :  { %459 = vst.msk [vmem:[#allocation8 + $0x28] sm:$0xff] %vm78_vm0, %v443_v35  ;;  %v263_v13 = vadd.f32 %v262_v9, %v261_v41 }
  0x59   :  { %460 = vst.msk [vmem:[#allocation8 + $0x30] sm:$0xff] %vm78_vm0, %v444_v27  ;;  %v394_v8 = vperm.slane %v378_v32, 0  ;;  %v341_v2 = vmul.f32 %v520_v54, %v340_v33 }
  0x5a   :  { %461 = vst.msk [vmem:[#allocation8 + $0x38] sm:$0xff] %vm78_vm0, %v445_v43  ;;  %v522_v48 = vpop.eup %521  ;;  %v264_v23 = vrot.slane %v263_v13, 4 }
  0x5b   :  { %v406_v46 = vmul.f32 %v394_v8, %v792_v6  ;;  %v407_v47 = vmul.f32 %v394_v8, %v795_v11  ;;  %v345_v37 = vsel %vm344_vm4, %v520_v54, %v341_v2  ;;  %v347_v34 = vmul.f32 %v522_v48, %v284_v22 }
  0x5c   :  { %v379_v14 = vmul.f32 %v371_v28, %v345_v37  ;;  %v265_v45 = vadd.f32 %v264_v23, %v263_v13  ;;  %vm353_vm6 = vweird.f32 %v522_v48 }
  0x5d   :  { %v446_v18 = vadd.f32 %v503_v7, %v406_v46  ;;  %v447_v19 = vadd.f32 %v503_v7, %v407_v47  ;;  %v348_v55 = vmul.f32 %v522_v48, %v347_v34  ;;  %vm354_vm7 = vmor %vm352_vm5, %vm353_vm6 }
  0x5e   :  { %v395_v50 = vperm.slane %v379_v14, 0  ;;  %v266_v11 = vrot.slane %v265_v45, 2 }
  0x5f   :  { %462 = vst.msk [vmem:[#allocation8 + $0x40] sm:$0xff] %vm78_vm0, %v446_v18  ;;  %v349_v54 = vmul.f32 0.5, %v348_v55 }
  0x60   :  { %463 = vst.msk [vmem:[#allocation8 + $0x48] sm:$0xff] %vm78_vm0, %v447_v19  ;;  %v408_v56 = vmul.f32 %v395_v50, %v805_v38  ;;  %v409_v6 = vmul.f32 %v395_v50, %v808_v39  ;;  %v267_v63 = vadd.f32 %v266_v11, %v265_v45 }
  0x61   :  { %v350_v0 = vsub.f32 1.5, %v349_v54 }
  0x62   :  { %v448_v58 = vadd.f32 %v504_v52, %v408_v56  ;;  %v449_v61 = vadd.f32 %v504_v52, %v409_v6  ;;  %v268_v40 = vrot.slane %v267_v63, 1 }
  0x63   :  { %v351_v10 = vmul.f32 %v522_v48, %v350_v0 }
  0x64   :  { %464 = vst.msk [vmem:[#allocation8 + $0x50] sm:$0xff] %vm78_vm0, %v448_v58  ;;  %v269_v15 = vadd.f32 %v268_v40, %v267_v63 }
  0x65   :  { %465 = vst.msk [vmem:[#allocation8 + $0x58] sm:$0xff] %vm78_vm0, %v449_v61  ;;  %v355_v38 = vsel %vm354_vm7, %v522_v48, %v351_v10 }
  0x66   :  { %v380_v16 = vmul.f32 %v372_v30, %v355_v38  ;;  %v277_v39 = vmul.f32 %v269_v15, %v726_v59 }
  0x68   :  { %v396_v57 = vperm.slane %v380_v16, 0  ;;  %v285_v20 = vadd.f32 1e-05, %v277_v39 }
  0x6a   :  { %v410_v29 = vmul.f32 %v396_v57, %v818_v51  ;;  %v411_v62 = vmul.f32 %v396_v57, %v823_v60  ;;  %523 = vrsqrt.f32 %v285_v20  ;;  %vm362_vm8 = vweird.f32 %v285_v20 }
  0x6c   :  { %v450_v31 = vadd.f32 %v505_v17, %v410_v29  ;;  %v451_v21 = vadd.f32 %v505_v17, %v411_v62 }
  0x6e   :  { %466 = vst.msk [vmem:[#allocation8 + $0x60] sm:$0xff] %vm78_vm0, %v450_v31 }
  0x6f   :  { %467 = vst.msk [vmem:[#allocation8 + $0x68] sm:$0xff] %vm78_vm0, %v451_v21 }
  0x70   :  { %v524_v1 = vpop.eup %523 }
  0x71   :  { %v357_v35 = vmul.f32 %v524_v1, %v285_v20  ;;  %vm363_vm9 = vweird.f32 %v524_v1 }
  0x72   :  { %vm364_vm10 = vmor %vm362_vm8, %vm363_vm9 }
  0x73   :  { %v358_v36 = vmul.f32 %v524_v1, %v357_v35 }
  0x75   :  { %v359_v3 = vmul.f32 0.5, %v358_v36 }
  0x77   :  { %v360_v59 = vsub.f32 1.5, %v359_v3 }
  0x79   :  { %v361_v42 = vmul.f32 %v524_v1, %v360_v59 }
  0x7b   :  { %v365_v51 = vsel %vm364_vm10, %v524_v1, %v361_v42 }
  0x7c   :  { %v381_v24 = vmul.f32 %v373_v25, %v365_v51 }
  0x7e   :  { %v397_v60 = vperm.slane %v381_v24, 0 }
  0x80   :  { %v412_v22 = vmul.f32 %v397_v60, %v911_v53  ;;  %v413_v49 = vmul.f32 %v397_v60, %v936_v4 }
  0x82   :  { %v452_v26 = vadd.f32 %v506_v12, %v412_v22  ;;  %v453_v27 = vadd.f32 %v506_v12, %v413_v49 }
  0x84   :  { %468 = vst.msk [vmem:[#allocation8 + $0x70] sm:$0xff] %vm78_vm0, %v452_v26 }
  0x85   :  { %469 = vst.msk [vmem:[#allocation8 + $0x78] sm:$0xff] %vm78_vm0, %v453_v27 }
  0x86   :  { %482 = dma.vmem_to_hbm [thread:$0]  %s475_s29, 2048, %s477_s5, [#allocation4], %s631_s24, %s631_s24, %s632_s25  }
  0x87   :  { %625 = dma.done.wait [#allocation4], 2048  }
  0x88   :  { %626 = vsyncadd [#allocation4], 4294965248 }
  0x89   :  { %487 = vsyncpa [#allocation3], 1 }
  0x8a   :  { %488 = vsyncpa [#allocation6], 1 }
  0x8b   :  { %489 = vsyncpa [#allocation4], 1 }

</bundles_post_ra>
